<compile_context>
chip_gen: v5e
topology: v5e:2x2
jax: 0.10.0
libtpu: 0.0.40
codegen_flags: <defaults>
</compile_context>

<pallas_src>
import functools
import math

import jax
import jax.numpy as jnp
from jax.experimental import pallas as pl
from jax.experimental.pallas import tpu as pltpu


def _round_up(n, m):
    return ((n + m - 1) // m) * m


# ---------------------------------------------------------------------------
# Kernel
# ---------------------------------------------------------------------------
def exgru_kernel(x_ref, h_ref, w_zr_ref, b_zr_ref, w_rhx_ref, bw_ref,
                 wy_ref, by_ref, out_ref, hid_ref, *, hp, h_real):
    x = x_ref[...]                      # (T, Ip) f32
    h = h_ref[...]                      # (T, Hp) f32
    w_zr = w_zr_ref[...]                # (Ip+Hp, 2Hp) matmul dtype (bf16 or f32)
    mm = w_zr.dtype

    x_m = x.astype(mm)
    h_m = h.astype(mm)

    # Both gates in ONE MXU matmul: contraction fused over [x, h]
    # (K = Ip + Hp fills the 256-deep v6e/v7x MXU), output fused over [z | r].
    # f32 accumulation, one wide bias add.
    zr = jnp.dot(jnp.concatenate([x_m, h_m], axis=1), w_zr,
                 preferred_element_type=jnp.float32) + b_zr_ref[...]
    z = zr[:, :hp]                      # raw Wz(concat(x, h))  (no sigmoid, per reference)
    r = zr[:, hp:]                      # raw Wr(concat(x, h))

    # h_tilde = tanh(concat([r*h, x]) @ [W_rh ; W_x] + bw): one deep-K matmul,
    # no separate half-deep x @ W_x pass and no extra VPU add.
    rhx = jnp.concatenate([(r * h).astype(mm), x_m], axis=1)
    h_tilde = jnp.tanh(jnp.dot(rhx, w_rhx_ref[...],
                               preferred_element_type=jnp.float32) + bw_ref[...])

    # hidden = sigmoid((1-z)*h + z*h_tilde), rewritten as h + z*(h_tilde - h)
    # (one fewer VPU op per element).
    hidden = jax.nn.sigmoid(h + z * (h_tilde - h))

    # Zero the padded hidden lanes (they would be sigmoid(0)=0.5 otherwise) so
    # the padded state buffer can be fed straight back as next-step h.
    if hp > h_real:
        lane = jax.lax.broadcasted_iota(jnp.int32, (1, hp), 1)
        hidden = jnp.where(lane < h_real, hidden, 0.0)

    output = jnp.dot(hidden.astype(mm), wy_ref[...],
                     preferred_element_type=jnp.float32) + by_ref[...]

    out_ref[...] = output.astype(out_ref.dtype)
    hid_ref[...] = hidden.astype(hid_ref.dtype)


# ---------------------------------------------------------------------------
# Parameter packing (call ONCE per sequence for recurrent use)
# ---------------------------------------------------------------------------
def pack_exgru_params(params, input_size, hidden_size, output_size,
                      matmul_dtype=jnp.bfloat16):
    """Split at the concat boundaries, zero-pad to 128-lane tiles, fuse along
    both the contraction and output axes, and cast weights to the MXU dtype."""
    I, H, O = input_size, hidden_size, output_size
    Ip, Hp, Op = _round_up(I, 128), _round_up(H, 128), _round_up(O, 128)

    def pad2(a, rows, cols):
        return jnp.pad(a, ((0, rows - a.shape[0]), (0, cols - a.shape[1])))

    wz_x, wz_h = params["wz"][:I], params["wz"][I:]    # Wz(concat(x, h))
    wr_x, wr_h = params["wr"][:I], params["wr"][I:]    # Wr(concat(x, h))
    w_rh, w_x = params["w"][:H], params["w"][H:]       # W (concat(r*h, x))

    # [[Wz_x | Wr_x],
    #  [Wz_h | Wr_h]]  -> single gate matmul, K = Ip + Hp, N = 2*Hp.
    w_zr = jnp.concatenate([
        jnp.concatenate([pad2(wz_x, Ip, Hp), pad2(wr_x, Ip, Hp)], axis=1),
        jnp.concatenate([pad2(wz_h, Hp, Hp), pad2(wr_h, Hp, Hp)], axis=1),
    ], axis=0).astype(matmul_dtype)                                   # (Ip+Hp, 2Hp)
    b_zr = jnp.concatenate([pad2(params["bz"], 1, Hp),
                            pad2(params["br"], 1, Hp)], axis=1)       # (1, 2Hp) f32

    # [W_rh ; W_x]  -> h_tilde matmul, K = Hp + Ip (input is concat([r*h, x])).
    w_rhx = jnp.concatenate([pad2(w_rh, Hp, Hp),
                             pad2(w_x, Ip, Hp)], axis=0).astype(matmul_dtype)  # (Hp+Ip, Hp)
    bw = pad2(params["bw"], 1, Hp)                                    # f32

    wy = pad2(params["wy"], Hp, Op).astype(matmul_dtype)              # (Hp, Op)
    by = pad2(params["by"], 1, Op)                                    # f32
    return {"w_zr": w_zr, "b_zr": b_zr, "w_rhx": w_rhx, "bw": bw,
            "wy": wy, "by": by}


# ---------------------------------------------------------------------------
# Tiling / VMEM heuristics
# ---------------------------------------------------------------------------
def _vmem_budget_bytes():
    # Generation-aware: ~75% of physical VMEM (96 MiB on 128-MiB v5e/v6e,
    # 48 MiB on 64-MiB v7x) -> headroom for Mosaic scratch + f32 temporaries.
    try:
        phys = int(pltpu.get_tpu_info().vmem_capacity_bytes)
    except Exception:
        phys = 64 << 20          # conservative fallback: assume v7x-sized VMEM
    return (phys * 3) // 4


def _choose_tile_b(batch_rows, resident_bytes, vmem_budget, Ip, Hp, Op):
    """Batch tile: as large as the VMEM budget allows (amortizes ~0.35us/grid
    step), avoid gross batch-pad waste, and keep a multi-tile 'parallel' grid
    when the batch is large enough (v7x's 2 TensorCores + pipelining)."""
    per_row = (2 * 4 * (Ip + 2 * Hp + Op)              # double-buffered streamed f32 tiles
               + 4 * (3 * (Ip + Hp) + 4 * Hp + Op))    # rough in-kernel temporaries
    avail = vmem_budget - resident_bytes
    max_rows = max(8, min(1024, avail // per_row)) if avail > 0 else 8

    candidates = [t for t in (1024, 512, 256, 128, 64, 32, 16, 8) if t <= max_rows] or [8]
    min_split = 64               # don't shrink tiles below this just to split the grid
    want_tiles = 4 if batch_rows >= 4 * min_split else (2 if batch_rows >= 2 * min_split else 1)

    best_t, best_key = None, None
    for t in candidates:
        n_tiles = -(-batch_rows // t)
        waste_frac = (n_tiles * t - batch_rows) / (n_tiles * t)
        key = (waste_frac > 0.25, n_tiles < want_tiles, -t)
        if best_key is None or key < best_key:
            best_t, best_key = t, key
    return best_t


def _const_spec(rows, cols):
    # Resident (constant index_map) operands: single-buffer them so weights are
    # not double-counted in VMEM (Pallas double-buffers inputs by default).
    idx = lambda i: (0, 0)
    try:
        return pl.BlockSpec((rows, cols), idx, pipeline_mode=pl.Buffered(1))
    except (AttributeError, TypeError):
        return pl.BlockSpec((rows, cols), idx)


# ---------------------------------------------------------------------------
# Padded single step (re-usable across timesteps without re-pad / re-pack)
# ---------------------------------------------------------------------------
def exgru_step_padded(x_p, h_p, packed, hidden_size):
    """One ExGRU step on pre-padded activations.
    x_p: (Bp, Ip) f32, h_p: (Bp, Hp) f32. Returns (output (Bp, Op), hidden (Bp, Hp))."""
    Bp, Ip = x_p.shape
    Hp = h_p.shape[1]
    Op = packed["wy"].shape[1]
    w_bytes = packed["w_zr"].dtype.itemsize

    resident_mult = 1 if hasattr(pl, "Buffered") else 2
    resident = resident_mult * (
        w_bytes * ((Ip + Hp) * 2 * Hp + (Hp + Ip) * Hp + Hp * Op)
        + 4 * (2 * Hp + Hp + Op))
    budget = _vmem_budget_bytes()
    # TODO(synk): for very large H (resident weights > budget: H ~ 1.5-2k on
    # v7x) add a weight-streaming fallback with a K-reduction grid axis
    # ('arbitrary') + f32 VMEM accumulator instead of forcing residency.
    tile_b = _choose_tile_b(Bp, resident, budget, Ip, Hp, Op)

    Bp2 = _round_up(Bp, tile_b)
    if Bp2 != Bp:
        x_p = jnp.pad(x_p, ((0, Bp2 - Bp), (0, 0)))
        h_p = jnp.pad(h_p, ((0, Bp2 - Bp), (0, 0)))
    grid = (Bp2 // tile_b,)

    row = lambda cols: pl.BlockSpec((tile_b, cols), lambda i: (i, 0))

    out, hid = pl.pallas_call(
        functools.partial(exgru_kernel, hp=Hp, h_real=hidden_size),
        grid=grid,
        in_specs=[
            row(Ip),                          # x tile          (streamed)
            row(Hp),                          # h tile          (streamed, aliased out)
            _const_spec(Ip + Hp, 2 * Hp),     # fused gate weights  (resident)
            _const_spec(1, 2 * Hp),           # fused gate bias     (resident)
            _const_spec(Hp + Ip, Hp),         # fused h_tilde weights (resident)
            _const_spec(1, Hp),               # bw                  (resident)
            _const_spec(Hp, Op),              # wy                  (resident)
            _const_spec(1, Op),               # by                  (resident)
        ],
        out_specs=(row(Op), row(Hp)),
        out_shape=(jax.ShapeDtypeStruct((Bp2, Op), jnp.float32),
                   jax.ShapeDtypeStruct((Bp2, Hp), jnp.float32)),
        input_output_aliases={1: 1},          # recurrent state buffer reuse
        compiler_params=pltpu.CompilerParams(
            dimension_semantics=("parallel",),
            vmem_limit_bytes=int(budget)),
    )(x_p, h_p, packed["w_zr"], packed["b_zr"], packed["w_rhx"],
      packed["bw"], packed["wy"], packed["by"])

    return out[:Bp], hid[:Bp]


# ---------------------------------------------------------------------------
# Convenience single-call wrapper
# ---------------------------------------------------------------------------
@functools.partial(jax.jit, static_argnames=("matmul_dtype",))
def exgru_forward(x, h, params, matmul_dtype=jnp.bfloat16):
    """x: (B, I), h: (B, H). Returns (output (B, O), hidden (B, H)).

    NOTE: for multi-timestep use, call pack_exgru_params once, pad x/h once,
    lax.scan exgru_step_padded over time re-using the padded hidden state, and
    slice the outputs once at the end — this per-call pad/pack/unpad exists
    only because this wrapper is a single step."""
    B, I = x.shape
    H = h.shape[1]
    O = params["wy"].shape[1]
    Ip, Hp = _round_up(I, 128), _round_up(H, 128)
    Bp = _round_up(B, 8)

    packed = pack_exgru_params(params, I, H, O, matmul_dtype)
    x_p = jnp.pad(x, ((0, Bp - B), (0, Ip - I)))
    h_p = jnp.pad(h, ((0, Bp - B), (0, Hp - H)))
    out, hid = exgru_step_padded(x_p, h_p, packed, H)
    return out[:B, :O], hid[:B, :H]


# ---------------------------------------------------------------------------
# Init + pure-JAX reference (matches the PyTorch forward exactly)
# ---------------------------------------------------------------------------
def init_params(key, input_size, output_size, hidden_size):
    """nn.Linear-style init (uniform +/- 1/sqrt(fan_in)); weights stored (in, out)."""
    ks = jax.random.split(key, 8)

    def lin(kw, kb, fan_in, fan_out):
        bound = 1.0 / math.sqrt(fan_in)
        w = jax.random.uniform(kw, (fan_in, fan_out), jnp.float32, -bound, bound)
        b = jax.random.uniform(kb, (1, fan_out), jnp.float32, -bound, bound)
        return w, b

    I, H, O = input_size, hidden_size, output_size
    wz, bz = lin(ks[0], ks[1], I + H, H)   # Wz: input concat(x, h)
    wr, br = lin(ks[2], ks[3], I + H, H)   # Wr: input concat(x, h)
    w, bw = lin(ks[4], ks[5], I + H, H)    # W : input concat(r*h, x)
    wy, by = lin(ks[6], ks[7], H, O)
    return {"wz": wz, "bz": bz, "wr": wr, "br": br,
            "w": w, "bw": bw, "wy": wy, "by": by}


def exgru_reference(x, h, p):
    xh = jnp.concatenate([x, h], axis=1)
    z = xh @ p["wz"] + p["bz"]
    r = xh @ p["wr"] + p["br"]
    h_tilde = jnp.tanh(jnp.concatenate([r * h, x], axis=1) @ p["w"] + p["bw"])
    hidden = jax.nn.sigmoid((1.0 - z) * h + z * h_tilde)
    output = hidden @ p["wy"] + p["by"]
    return output, hidden


if __name__ == "__main__":
    B, I, H, O = 2, 16, 32, 8

    key = jax.random.PRNGKey(0)
    k_x, k_h, k_p = jax.random.split(key, 3)

    x = jax.random.normal(k_x, (B, I), jnp.float32)
    h0 = jnp.zeros((B, H), jnp.float32)                            # init_hidden(bs)
    h0 = h0 + 0.1 * jax.random.normal(k_h, (B, H), jnp.float32)    # nonzero state too

    params = init_params(k_p, I, O, H)
    ref_out, ref_hid = exgru_reference(x, h0, params)

    # Default fast path: bf16 MXU operands, f32 accumulation / elementwise.
    out, hidden = exgru_forward(x, h0, params)
    jax.block_until_ready((out, hidden))
    assert out.shape == (B, O) and hidden.shape == (B, H)
    assert jnp.allclose(out, ref_out, atol=5e-2), "bf16 output mismatch"
    assert jnp.allclose(hidden, ref_hid, atol=5e-2), "bf16 hidden mismatch"

    # f32 MXU-operand path for tight numerical parity with the reference.
    out32, hid32 = exgru_forward(x, h0, params, matmul_dtype=jnp.float32)
    jax.block_until_ready((out32, hid32))
    assert jnp.allclose(out32, ref_out, atol=1e-4), "f32 output mismatch"
    assert jnp.allclose(hid32, ref_hid, atol=1e-4), "f32 hidden mismatch"

    print("KERNEL_OK")
</pallas_src>

<mosaic_0001>
module attributes {stable_mosaic.version = 11 : i64} {
  func.func @exgru_kernel(%arg0: i32, %arg1: memref<8x128xf32, #tpu.memory_space<vmem>>, %arg2: memref<8x128xf32, #tpu.memory_space<vmem>>, %arg3: memref<256x256xbf16, #tpu.memory_space<vmem>>, %arg4: memref<1x256xf32, #tpu.memory_space<vmem>>, %arg5: memref<256x128xbf16, #tpu.memory_space<vmem>>, %arg6: memref<1x128xf32, #tpu.memory_space<vmem>>, %arg7: memref<128x128xbf16, #tpu.memory_space<vmem>>, %arg8: memref<1x128xf32, #tpu.memory_space<vmem>>, %arg9: memref<8x128xf32, #tpu.memory_space<vmem>>, %arg10: memref<8x128xf32, #tpu.memory_space<vmem>>) attributes {dimension_semantics = [#tpu.dimension_semantics<parallel>], iteration_bounds = array<i64: 1>, scalar_prefetch = 0 : i64, scratch_operands = 0 : i64, tpu.core_type = #tpu.core_type<tc>, window_params = [{transform_indices = @transform_0, window_bounds = array<i64: 8, 128>}, {transform_indices = @transform_1, window_bounds = array<i64: 8, 128>}, {pipeline_mode = #tpu.pipeline_mode<synchronous>, transform_indices = @transform_2, window_bounds = array<i64: 256, 256>}, {pipeline_mode = #tpu.pipeline_mode<synchronous>, transform_indices = @transform_3, window_bounds = array<i64: 1, 256>}, {pipeline_mode = #tpu.pipeline_mode<synchronous>, transform_indices = @transform_4, window_bounds = array<i64: 256, 128>}, {pipeline_mode = #tpu.pipeline_mode<synchronous>, transform_indices = @transform_5, window_bounds = array<i64: 1, 128>}, {pipeline_mode = #tpu.pipeline_mode<synchronous>, transform_indices = @transform_6, window_bounds = array<i64: 128, 128>}, {pipeline_mode = #tpu.pipeline_mode<synchronous>, transform_indices = @transform_7, window_bounds = array<i64: 1, 128>}, {transform_indices = @transform_8, window_bounds = array<i64: 8, 128>}, {transform_indices = @transform_9, window_bounds = array<i64: 8, 128>}]} {
    %c0 = arith.constant 0 : index
    %c0_0 = arith.constant 0 : index
    %0 = vector.load %arg1[%c0, %c0_0] : memref<8x128xf32, #tpu.memory_space<vmem>>, vector<8x128xf32>
    %c0_1 = arith.constant 0 : index
    %c0_2 = arith.constant 0 : index
    %1 = vector.load %arg2[%c0_1, %c0_2] : memref<8x128xf32, #tpu.memory_space<vmem>>, vector<8x128xf32>
    %c0_3 = arith.constant 0 : index
    %c0_4 = arith.constant 0 : index
    %2 = vector.load %arg3[%c0_3, %c0_4] : memref<256x256xbf16, #tpu.memory_space<vmem>>, vector<256x256xbf16>
    %3 = arith.truncf %0 : vector<8x128xf32> to vector<8x128xbf16>
    %4 = arith.truncf %1 : vector<8x128xf32> to vector<8x128xbf16>
    %5 = tpu.concatenate %3, %4 in 1 : vector<8x128xbf16>, vector<8x128xbf16> -> vector<8x256xbf16>
    %cst = arith.constant dense<0.000000e+00> : vector<8x256xf32>
    %6 = tpu.matmul %5, %2, %cst {dimension_numbers = #tpu.dot_dimension_numbers<[1], [0], [0], [1], [0, 0, 1, 1], [], []>} : vector<8x256xbf16>, vector<256x256xbf16>, vector<8x256xf32> -> vector<8x256xf32>
    %c0_5 = arith.constant 0 : index
    %c0_6 = arith.constant 0 : index
    %7 = vector.load %arg4[%c0_5, %c0_6] : memref<1x256xf32, #tpu.memory_space<vmem>>, vector<1x256xf32>
    %8 = vector.broadcast %7 : vector<1x256xf32> to vector<8x256xf32>
    %9 = arith.addf %6, %8 : vector<8x256xf32>
    %10 = vector.extract_strided_slice %9 {offsets = [0, 0], sizes = [8, 128], strides = [1, 1]} : vector<8x256xf32> to vector<8x128xf32>
    %11 = vector.extract_strided_slice %9 {offsets = [0, 128], sizes = [8, 128], strides = [1, 1]} : vector<8x256xf32> to vector<8x128xf32>
    %12 = arith.mulf %11, %1 : vector<8x128xf32>
    %13 = arith.truncf %12 : vector<8x128xf32> to vector<8x128xbf16>
    %14 = tpu.concatenate %13, %3 in 1 : vector<8x128xbf16>, vector<8x128xbf16> -> vector<8x256xbf16>
    %c0_7 = arith.constant 0 : index
    %c0_8 = arith.constant 0 : index
    %15 = vector.load %arg5[%c0_7, %c0_8] : memref<256x128xbf16, #tpu.memory_space<vmem>>, vector<256x128xbf16>
    %cst_9 = arith.constant dense<0.000000e+00> : vector<8x128xf32>
    %16 = tpu.matmul %14, %15, %cst_9 {dimension_numbers = #tpu.dot_dimension_numbers<[1], [0], [0], [1], [0, 0, 1, 1], [], []>} : vector<8x256xbf16>, vector<256x128xbf16>, vector<8x128xf32> -> vector<8x128xf32>
    %c0_10 = arith.constant 0 : index
    %c0_11 = arith.constant 0 : index
    %17 = vector.load %arg6[%c0_10, %c0_11] : memref<1x128xf32, #tpu.memory_space<vmem>>, vector<1x128xf32>
    %18 = vector.broadcast %17 : vector<1x128xf32> to vector<8x128xf32>
    %19 = arith.addf %16, %18 : vector<8x128xf32>
    %20 = math.tanh %19 : vector<8x128xf32>
    %21 = arith.subf %20, %1 : vector<8x128xf32>
    %22 = arith.mulf %10, %21 : vector<8x128xf32>
    %23 = arith.addf %1, %22 : vector<8x128xf32>
    %24 = arith.negf %23 : vector<8x128xf32>
    %25 = math.exp %24 : vector<8x128xf32>
    %cst_12 = arith.constant 1.000000e+00 : f32
    %26 = vector.broadcast %cst_12 : f32 to vector<8x128xf32>
    %27 = arith.addf %26, %25 : vector<8x128xf32>
    %28 = arith.divf %26, %27 : vector<8x128xf32>
    %29 = tpu.iota {dimensions = array<i32: 1>} : vector<1x128xi32>
    %c32_i32 = arith.constant 32 : i32
    %30 = vector.broadcast %c32_i32 : i32 to vector<1x128xi32>
    %31 = arith.cmpi slt, %29, %30 : vector<1x128xi32>
    %cst_13 = arith.constant 0.000000e+00 : f32
    %32 = vector.shape_cast %31 : vector<1x128xi1> to vector<1x128xi1>
    %33 = vector.broadcast %32 : vector<1x128xi1> to vector<8x128xi1>
    %34 = vector.broadcast %cst_13 : f32 to vector<8x128xf32>
    %35 = arith.select %33, %28, %34 : vector<8x128xi1>, vector<8x128xf32>
    %36 = arith.truncf %35 : vector<8x128xf32> to vector<8x128xbf16>
    %c0_14 = arith.constant 0 : index
    %c0_15 = arith.constant 0 : index
    %37 = vector.load %arg7[%c0_14, %c0_15] : memref<128x128xbf16, #tpu.memory_space<vmem>>, vector<128x128xbf16>
    %cst_16 = arith.constant dense<0.000000e+00> : vector<8x128xf32>
    %38 = tpu.matmul %36, %37, %cst_16 {dimension_numbers = #tpu.dot_dimension_numbers<[1], [0], [0], [1], [0, 0, 1, 1], [], []>} : vector<8x128xbf16>, vector<128x128xbf16>, vector<8x128xf32> -> vector<8x128xf32>
    %c0_17 = arith.constant 0 : index
    %c0_18 = arith.constant 0 : index
    %39 = vector.load %arg8[%c0_17, %c0_18] : memref<1x128xf32, #tpu.memory_space<vmem>>, vector<1x128xf32>
    %40 = vector.broadcast %39 : vector<1x128xf32> to vector<8x128xf32>
    %41 = arith.addf %38, %40 : vector<8x128xf32>
    %c0_19 = arith.constant 0 : index
    %c0_20 = arith.constant 0 : index
    %42 = vector.load %arg9[%c0_19, %c0_20] : memref<8x128xf32, #tpu.memory_space<vmem>>, vector<8x128xf32>
    tpu.vector_store %arg9[%c0_19, %c0_20], %41 {strides = array<i32>} : memref<8x128xf32, #tpu.memory_space<vmem>>, vector<8x128xf32>,
    %c0_21 = arith.constant 0 : index
    %c0_22 = arith.constant 0 : index
    %43 = vector.load %arg10[%c0_21, %c0_22] : memref<8x128xf32, #tpu.memory_space<vmem>>, vector<8x128xf32>
    tpu.vector_store %arg10[%c0_21, %c0_22], %35 {strides = array<i32>} : memref<8x128xf32, #tpu.memory_space<vmem>>, vector<8x128xf32>,
    return
  }
  func.func @transform_0(%arg0: i32) -> (i32, i32) {
    %c0_i32 = arith.constant 0 : i32
    %c0_i32_0 = arith.constant 0 : i32
    return %arg0, %c0_i32 : i32, i32
  }
  func.func @transform_1(%arg0: i32) -> (i32, i32) {
    %c0_i32 = arith.constant 0 : i32
    %c0_i32_0 = arith.constant 0 : i32
    return %arg0, %c0_i32 : i32, i32
  }
  func.func @transform_2(%arg0: i32) -> (i32, i32) {
    %c0_i32 = arith.constant 0 : i32
    %c0_i32_0 = arith.constant 0 : i32
    %c0_i32_1 = arith.constant 0 : i32
    return %c0_i32, %c0_i32_0 : i32, i32
  }
  func.func @transform_3(%arg0: i32) -> (i32, i32) {
    %c0_i32 = arith.constant 0 : i32
    %c0_i32_0 = arith.constant 0 : i32
    %c0_i32_1 = arith.constant 0 : i32
    return %c0_i32, %c0_i32_0 : i32, i32
  }
  func.func @transform_4(%arg0: i32) -> (i32, i32) {
    %c0_i32 = arith.constant 0 : i32
    %c0_i32_0 = arith.constant 0 : i32
    %c0_i32_1 = arith.constant 0 : i32
    return %c0_i32, %c0_i32_0 : i32, i32
  }
  func.func @transform_5(%arg0: i32) -> (i32, i32) {
    %c0_i32 = arith.constant 0 : i32
    %c0_i32_0 = arith.constant 0 : i32
    %c0_i32_1 = arith.constant 0 : i32
    return %c0_i32, %c0_i32_0 : i32, i32
  }
  func.func @transform_6(%arg0: i32) -> (i32, i32) {
    %c0_i32 = arith.constant 0 : i32
    %c0_i32_0 = arith.constant 0 : i32
    %c0_i32_1 = arith.constant 0 : i32
    return %c0_i32, %c0_i32_0 : i32, i32
  }
  func.func @transform_7(%arg0: i32) -> (i32, i32) {
    %c0_i32 = arith.constant 0 : i32
    %c0_i32_0 = arith.constant 0 : i32
    %c0_i32_1 = arith.constant 0 : i32
    return %c0_i32, %c0_i32_0 : i32, i32
  }
  func.func @transform_8(%arg0: i32) -> (i32, i32) {
    %c0_i32 = arith.constant 0 : i32
    %c0_i32_0 = arith.constant 0 : i32
    return %arg0, %c0_i32 : i32, i32
  }
  func.func @transform_9(%arg0: i32) -> (i32, i32) {
    %c0_i32 = arith.constant 0 : i32
    %c0_i32_0 = arith.constant 0 : i32
    return %arg0, %c0_i32 : i32, i32
  }
}

</mosaic_0001>

<bundles_post_ra>
// kernel: exgru_forward.1
= control target key start
LH: loop header
LB: loop body
LE: loop exit
PB: predicated region body
PF: predicated region fallthrough
CT: control target
= control target key end

     0   :  { %s1200_s2 = inlined_call_operand.vmem [shape: bf16[256,256], index: 2, kind: input, shape index: {}]   ;;  %s1201_s0 = inlined_call_operand.vmem [shape: f32[8,128], index: 0, kind: input, shape index: {}]   ;;  %s1202_s1 = inlined_call_operand.vmem [shape: f32[8,128], index: 1, kind: input, shape index: {}, may-alias: {1,9}]   ;;  %s1203_s4 = inlined_call_operand.vmem [shape: bf16[256,128], index: 4, kind: input, shape index: {}]   ;;  %s1204_s5 = inlined_call_operand.vmem [shape: f32[1,128], index: 5, kind: input, shape index: {}]   ;;  %s1205_s3 = inlined_call_operand.vmem [shape: f32[1,256], index: 3, kind: input, shape index: {}]   ;;  %s1206_s7 = inlined_call_operand.vmem [shape: f32[1,128], index: 7, kind: input, shape index: {}]   ;;  %s1207_s6 = inlined_call_operand.vmem [shape: bf16[128,128], index: 6, kind: input, shape index: {}]   ;;  %s1208_s9 = inlined_call_operand.vmem [shape: f32[8,128], index: 9, kind: output, shape index: {1}, may-alias: {1,9}]   ;;  %s1209_s8 = inlined_call_operand.vmem [shape: f32[8,128], index: 8, kind: output, shape index: {0}]  }
   0x1   :  { %v808_v0 = vld [vmem:[%s1200_s2 + $0x74] sm:$0xf]  ;;  %v626_v1 = vld [vmem:[%s1200_s2 + $0x78] sm:$0xf0]  ;;  %v806_v5 = vld [vmem:[%s1200_s2 + $0x64] sm:$0xf] }
   0x2   :  { %v824_v2 = vld [vmem:[%s1200_s2 + $0xf4] sm:$0xf]  ;;  %v629_v3 = vor.u32 %v808_v0, %v626_v1  ;;  %v690_v4 = vld [vmem:[%s1200_s2 + $0xf8] sm:$0xf0]  ;;  %v618_v6 = vld [vmem:[%s1200_s2 + $0x68] sm:$0xf0] }
   0x3   :  { %v693_v7 = vor.u32 %v824_v2, %v690_v4  ;;  %v822_v8 = vld [vmem:[%s1200_s2 + $0xe4] sm:$0xf]  ;;  %v682_v9 = vld [vmem:[%s1200_s2 + $0xe8] sm:$0xf0]  ;;  %v621_v10 = vor.u32 %v806_v5, %v618_v6  ;;  %v804_v12 = vld [vmem:[%s1200_s2 + $0x54] sm:$0xf] }
   0x4   :  { %259 = vmatpush.bf16.msra.mxu2 %v629_v3  ;;  %v685_v11 = vor.u32 %v822_v8, %v682_v9  ;;  %v610_v13 = vld [vmem:[%s1200_s2 + $0x58] sm:$0xf0]  ;;  %v820_v14 = vld [vmem:[%s1200_s2 + $0xd4] sm:$0xf]  ;;  %v802_v18 = vld [vmem:[%s1200_s2 + $0x44] sm:$0xf] }
   0x5   :  { %272 = vmatpush.bf16.msra.mxu3 %v693_v7  ;;  %v674_v15 = vld [vmem:[%s1200_s2 + $0xd8] sm:$0xf0]  ;;  %v613_v16 = vor.u32 %v804_v12, %v610_v13  ;;  %v602_v19 = vld [vmem:[%s1200_s2 + $0x48] sm:$0xf0]  ;;  %v818_v20 = vld [vmem:[%s1200_s2 + $0xc4] sm:$0xf] }
   0x6   :  { %v677_v17 = vor.u32 %v820_v14, %v674_v15  ;;  %v666_v21 = vld [vmem:[%s1200_s2 + $0xc8] sm:$0xf0]  ;;  %v800_v22 = vld [vmem:[%s1200_s2 + $0x34] sm:$0xf]  ;;  %v605_v23 = vor.u32 %v802_v18, %v602_v19  ;;  %v594_v24 = vld [vmem:[%s1200_s2 + $0x38] sm:$0xf0] }
   0x7   :  { %v688_v25 = vld [vmem:[%s1200_s2 + $0xf0] sm:$0xf]  ;;  %v825_v26 = vld [vmem:[%s1200_s2 + $0xf4] sm:$0xf0]  ;;  %v669_v27 = vor.u32 %v818_v20, %v666_v21  ;;  %v680_v29 = vld [vmem:[%s1200_s2 + $0xe0] sm:$0xf]  ;;  %v597_v39 = vor.u32 %v800_v22, %v594_v24 }
   0x8   :  { %260 = vmatpush.bf16.msra.mxu2 %v621_v10  ;;  %v689_v28 = vor.u32 %v825_v26, %v688_v25  ;;  %v823_v30 = vld [vmem:[%s1200_s2 + $0xe4] sm:$0xf0]  ;;  %v624_v31 = vld [vmem:[%s1200_s2 + $0x70] sm:$0xf]  ;;  %v816_v32 = vld [vmem:[%s1200_s2 + $0xb4] sm:$0xf] }
   0x9   :  { %273 = vmatpush.bf16.msra.mxu3 %v685_v11  ;;  %v658_v33 = vld [vmem:[%s1200_s2 + $0xb8] sm:$0xf0]  ;;  %v809_v34 = vld [vmem:[%s1200_s2 + $0x74] sm:$0xf0]  ;;  %v681_v35 = vor.u32 %v823_v30, %v680_v29  ;;  %v616_v37 = vld [vmem:[%s1200_s2 + $0x60] sm:$0xf] }
   0xa   :  { %246 = vmatpush.bf16.msra.mxu1 %v689_v28  ;;  %v625_v36 = vor.u32 %v809_v34, %v624_v31  ;;  %v807_v38 = vld [vmem:[%s1200_s2 + $0x64] sm:$0xf0]  ;;  %v672_v40 = vld [vmem:[%s1200_s2 + $0xd0] sm:$0xf]  ;;  %v821_v41 = vld [vmem:[%s1200_s2 + $0xd4] sm:$0xf0]  ;;  %v661_v42 = vor.u32 %v816_v32, %v658_v33 }
   0xb   :  { %v798_v43 = vld [vmem:[%s1200_s2 + $0x24] sm:$0xf]  ;;  %v586_v44 = vld [vmem:[%s1200_s2 + $0x28] sm:$0xf0]  ;;  %v617_v46 = vor.u32 %v807_v38, %v616_v37  ;;  %v608_v48 = vld [vmem:[%s1200_s2 + $0x50] sm:$0xf]  ;;  %v673_v50 = vor.u32 %v821_v41, %v672_v40 }
   0xc   :  { %261 = vmatpush.bf16.msra.mxu2 %v613_v16  ;;  %v814_v45 = vld [vmem:[%s1200_s2 + $0xa4] sm:$0xf]  ;;  %233 = vmatpush.bf16.msra.mxu0 %v625_v36  ;;  %v650_v47 = vld [vmem:[%s1200_s2 + $0xa8] sm:$0xf0]  ;;  %v805_v49 = vld [vmem:[%s1200_s2 + $0x54] sm:$0xf0]  ;;  %v589_v51 = vor.u32 %v798_v43, %v586_v44 }
   0xd   :  { %274 = vmatpush.bf16.msra.mxu3 %v677_v17  ;;  %v664_v52 = vld [vmem:[%s1200_s2 + $0xc0] sm:$0xf]  ;;  %v819_v53 = vld [vmem:[%s1200_s2 + $0xc4] sm:$0xf0]  ;;  %v653_v54 = vor.u32 %v814_v45, %v650_v47  ;;  %v796_v55 = vld [vmem:[%s1200_s2 + $0x14] sm:$0xf]  ;;  %v609_v58 = vor.u32 %v805_v49, %v608_v48 }
   0xe   :  { %247 = vmatpush.bf16.msra.mxu1 %v681_v35  ;;  %v578_v56 = vld [vmem:[%s1200_s2 + $0x18] sm:$0xf0]  ;;  %v812_v57 = vld [vmem:[%s1200_s2 + $0x94] sm:$0xf]  ;;  %v600_v60 = vld [vmem:[%s1200_s2 + $0x40] sm:$0xf]  ;;  %v665_v62 = vor.u32 %v819_v53, %v664_v52 }
   0xf   :  { %v642_v59 = vld [vmem:[%s1200_s2 + $0x98] sm:$0xf0]  ;;  %v803_v61 = vld [vmem:[%s1200_s2 + $0x44] sm:$0xf0]  ;;  %v581_v63 = vor.u32 %v796_v55, %v578_v56  ;;  %v656_v0 = vld [vmem:[%s1200_s2 + $0xb0] sm:$0xf] }
  0x10   :  { %262 = vmatpush.bf16.msra.mxu2 %v605_v23  ;;  %234 = vmatpush.bf16.msra.mxu0 %v617_v46  ;;  %v817_v1 = vld [vmem:[%s1200_s2 + $0xb4] sm:$0xf0]  ;;  %v645_v2 = vor.u32 %v812_v57, %v642_v59  ;;  %v794_v3 = vld [vmem:[%s1200_s2 + $0x4] sm:$0xf]  ;;  %v570_v4 = vld [vmem:[%s1200_s2 + $0x8] sm:$0xf0]  ;;  %v601_v6 = vor.u32 %v803_v61, %v600_v60 }
  0x11   :  { %275 = vmatpush.bf16.msra.mxu3 %v669_v27  ;;  %v810_v5 = vld [vmem:[%s1200_s2 + $0x84] sm:$0xf]  ;;  %v634_v7 = vld [vmem:[%s1200_s2 + $0x88] sm:$0xf0]  ;;  %v592_v8 = vld [vmem:[%s1200_s2 + $0x30] sm:$0xf]  ;;  %v657_v10 = vor.u32 %v817_v1, %v656_v0  ;;  %v573_v11 = vor.u32 %v794_v3, %v570_v4 }
  0x12   :  { %248 = vmatpush.bf16.msra.mxu1 %v673_v50  ;;  %v801_v9 = vld [vmem:[%s1200_s2 + $0x34] sm:$0xf0]  ;;  %v31_v12 = vld [vmem:[%s1201_s0] sm:$0xff]  ;;  %v815_v14 = vld [vmem:[%s1200_s2 + $0xa4] sm:$0xf0]  ;;  %v637_v15 = vor.u32 %v810_v5, %v634_v7 }
  0x13   :  { %v648_v13 = vld [vmem:[%s1200_s2 + $0xa0] sm:$0xf]  ;;  %v593_v17 = vor.u32 %v801_v9, %v592_v8  ;;  %v799_v19 = vld [vmem:[%s1200_s2 + $0x24] sm:$0xf0]  ;;  %v65_v20 = vpack.c.bf16 %v31_v12, %v31_v12  ;;  %v640_v23 = vld [vmem:[%s1200_s2 + $0x90] sm:$0xf] }
  0x14   :  { %263 = vmatpush.bf16.msra.mxu2 %v597_v39  ;;  %235 = vmatpush.bf16.msra.mxu0 %v609_v58  ;;  %v1076_v16 = vld [vmem:[%s1202_s1] sm:$0xff]  ;;  %v649_v21 = vor.u32 %v815_v14, %v648_v13  ;;  %v813_v24 = vld [vmem:[%s1200_s2 + $0x94] sm:$0xf0]  ;;  %v576_v26 = vld [vmem:[%s1200_s2 + $0x10] sm:$0xf] }
  0x15   :  { %276 = vmatpush.bf16.msra.mxu3 %v661_v42  ;;  %v584_v18 = vld [vmem:[%s1200_s2 + $0x20] sm:$0xf]  ;;  %v66_v22 = vpack.c.bf16 %v1076_v16, %v1076_v16  ;;  %v797_v27 = vld [vmem:[%s1200_s2 + $0x14] sm:$0xf0]  ;;  %v641_v28 = vor.u32 %v813_v24, %v640_v23  ;;  %v811_v30 = vld [vmem:[%s1200_s2 + $0x84] sm:$0xf0] }
  0x16   :  { %249 = vmatpush.bf16.msra.mxu1 %v665_v62  ;;  %v585_v25 = vor.u32 %v799_v19, %v584_v18  ;;  %v632_v29 = vld [vmem:[%s1200_s2 + $0x80] sm:$0xf]  ;;  %v577_v31 = vor.u32 %v797_v27, %v576_v26  ;;  %v795_v33 = vld [vmem:[%s1200_s2 + $0x4] sm:$0xf0]  ;;  %v841_v35 = vld [vmem:[%s1203_s4 + $0x78] sm:$0xff] }
  0x17   :  { %v568_v32 = vld [vmem:[%s1200_s2] sm:$0xf]  ;;  %v633_v34 = vor.u32 %v811_v30, %v632_v29  ;;  %v833_v37 = vld [vmem:[%s1203_s4 + $0x38] sm:$0xff]  ;;  %v840_v38 = vld [vmem:[%s1203_s4 + $0x70] sm:$0xff] }
  0x18   :  { %264 = vmatpush.bf16.msra.mxu2 %v589_v51  ;;  %236 = vmatpush.bf16.msra.mxu0 %v601_v6  ;;  %v569_v36 = vor.u32 %v795_v33, %v568_v32  ;;  %v832_v39 = vld [vmem:[%s1203_s4 + $0x30] sm:$0xff]  ;;  %v839_v40 = vld [vmem:[%s1203_s4 + $0x68] sm:$0xff]  ;;  %v838_v42 = vld [vmem:[%s1203_s4 + $0x60] sm:$0xff] }
  0x19   :  { %277 = vmatpush.bf16.msra.mxu3 %v653_v54  ;;  %v831_v41 = vld [vmem:[%s1203_s4 + $0x28] sm:$0xff]  ;;  %v830_v43 = vld [vmem:[%s1203_s4 + $0x20] sm:$0xff]  ;;  %v837_v44 = vld [vmem:[%s1203_s4 + $0x58] sm:$0xff] }
  0x1a   :  { %250 = vmatpush.bf16.msra.mxu1 %v657_v10  ;;  %v829_v45 = vld [vmem:[%s1203_s4 + $0x18] sm:$0xff]  ;;  %v836_v46 = vld [vmem:[%s1203_s4 + $0x50] sm:$0xff]  ;;  %v835_v48 = vld [vmem:[%s1203_s4 + $0x48] sm:$0xff] }
  0x1b   :  { %v828_v47 = vld [vmem:[%s1203_s4 + $0x10] sm:$0xff]  ;;  %v834_v49 = vld [vmem:[%s1203_s4 + $0x40] sm:$0xff]  ;;  %v827_v50 = vld [vmem:[%s1203_s4 + $0x8] sm:$0xff] }
  0x1c   :  { %265 = vmatpush.bf16.msra.mxu2 %v581_v63  ;;  %237 = vmatpush.bf16.msra.mxu0 %v593_v17  ;;  %v826_v51 = vld [vmem:[%s1203_s4] sm:$0xff]  ;;  %v849_v7 = vld [vmem:[%s1207_s6 + $0x38] sm:$0xff]  ;;  %v848_v8 = vld [vmem:[%s1207_s6 + $0x30] sm:$0xff] }
  0x1d   :  { %278 = vmatpush.bf16.msra.mxu3 %v645_v2  ;;  %v67_v52 = vld [vmem:[%s1205_s3] sm:$0x3]  ;;  %v847_v9 = vld [vmem:[%s1207_s6 + $0x28] sm:$0xff]  ;;  %v845_v12 = vld [vmem:[%s1207_s6 + $0x18] sm:$0xff] }
  0x1e   :  { %251 = vmatpush.bf16.msra.mxu1 %v649_v21  ;;  %v70_v53 = vperm.slane %v67_v52, 1  ;;  %v69_v58 = vperm.slane %v67_v52, 0  ;;  %v846_v10 = vld [vmem:[%s1207_s6 + $0x20] sm:$0xff]  ;;  %v843_v18 = vld [vmem:[%s1207_s6 + $0x8] sm:$0xff] }
  0x20   :  { %266 = vmatpush.bf16.msra.mxu2 %v573_v11  ;;  %238 = vmatpush.bf16.msra.mxu0 %v585_v25  ;;  %v850_v11 = vld [vmem:[%s1204_s5] ss:$0 sm:$0xff] }
  0x21   :  { %279 = vmatpush.bf16.msra.mxu3 %v637_v15  ;;  %v844_v15 = vld [vmem:[%s1207_s6 + $0x10] sm:$0xff] }
  0x22   :  { %252 = vmatpush.bf16.msra.mxu1 %v641_v28  ;;  %v468_v28 = vlaneseq }
  0x23   :  { %267 = vmatmul.bf16.vlgmr.msra.gmra.mxu2 %v65_v20 }
  0x24   :  { %280 = vmatmul.bf16.vlgmr.msra.gmra.mxu3 %v66_v22  ;;  %239 = vmatpush.bf16.msra.mxu0 %v577_v31  ;;  %v469_v32 = vand.u32 127, %v468_v28 }
  0x25   :  { %543 = vmatpush.bf16.msrb.mxu2 %v849_v7 }
  0x26   :  { %253 = vmatpush.bf16.msra.mxu1 %v633_v34  ;;  %vm470_vm2 = vcmp.lt.s32.totalorder %v469_v32, 32 }
  0x27   :  { %vm791_vm5 = vmpackc.low %vm470_vm2, %vm470_vm2 }
  0x28   :  { %240 = vmatpush.bf16.msra.mxu0 %v569_v36 }
  0x29   :  { %254 = vmatmul.bf16.vlgmr.msra.gmra.mxu1 %v66_v22  ;;  %544 = vmatpush.bf16.msrb.mxu2 %v848_v8 }
  0x2a   :  { %432 = vmatpush.bf16.msrb.mxu1 %v841_v35 }
  0x2b   :  { %241 = vmatmul.bf16.vlgmr.msra.gmra.mxu0 %v65_v20 }
  0x2c   :  { %419 = vmatpush.bf16.msrb.mxu0 %v833_v37 }
  0x2d   :  { %545 = vmatpush.bf16.msrb.mxu2 %v847_v9 }
  0x2e   :  { %433 = vmatpush.bf16.msrb.mxu1 %v840_v38 }
  0x30   :  { %420 = vmatpush.bf16.msrb.mxu0 %v832_v39 }
  0x31   :  { %546 = vmatpush.bf16.msrb.mxu2 %v846_v10 }
  0x32   :  { %434 = vmatpush.bf16.msrb.mxu1 %v839_v40 }
  0x34   :  { %421 = vmatpush.bf16.msrb.mxu0 %v831_v41  ;;  %v851_v41 = vld [vmem:[%s1206_s7] ss:$0 sm:$0xff] }
  0x35   :  { %547 = vmatpush.bf16.msrb.mxu2 %v845_v12 }
  0x36   :  { %435 = vmatpush.bf16.msrb.mxu1 %v838_v42 }
  0x38   :  { %422 = vmatpush.bf16.msrb.mxu0 %v830_v43 }
  0x39   :  { %548 = vmatpush.bf16.msrb.mxu2 %v844_v15 }
  0x3a   :  { %436 = vmatpush.bf16.msrb.mxu1 %v837_v44 }
  0x3c   :  { %423 = vmatpush.bf16.msrb.mxu0 %v829_v45 }
  0x3d   :  { %549 = vmatpush.bf16.msrb.mxu2 %v843_v18 }
  0x3e   :  { %437 = vmatpush.bf16.msrb.mxu1 %v836_v46 }
  0x40   :  { %424 = vmatpush.bf16.msrb.mxu0 %v828_v47 }
  0x42   :  { %438 = vmatpush.bf16.msrb.mxu1 %v835_v48 }
  0x44   :  { %425 = vmatpush.bf16.msrb.mxu0 %v827_v50 }
  0x46   :  { %439 = vmatpush.bf16.msrb.mxu1 %v834_v49 }
  0x48   :  { %426 = vmatpush.bf16.msrb.mxu0 %v826_v51 }
  0x49   :  { %440 = vmatmul.bf16.vlgmr.msrb.gmra.mxu1 %v65_v20  ;;  %v842_v20 = vld [vmem:[%s1207_s6] sm:$0xff] }
  0x4a   :  { %550 = vmatpush.bf16.msrb.mxu2 %v842_v20 }
  0xa6   :  { %v268_v54 = vpop.f32.mrf.mxu2  ;;  %v255_v60 = vpop.f32.mrf.mxu1 }
  0xa7   :  { %v269_v55 = vadd.f32 %v268_v54, %v70_v53  ;;  %v281_v56 = vpop.f32.mrf.mxu3 }
  0xa8   :  { %v242_v62 = vpop.f32.mrf.mxu0 }
  0xa9   :  { %v282_v57 = vadd.f32 %v281_v56, %v269_v55  ;;  %v243_v0 = vadd.f32 %v242_v62, %v69_v58 }
  0xab   :  { %v285_v59 = vmul.f32 %v282_v57, %v1076_v16  ;;  %v256_v2 = vadd.f32 %v255_v60, %v243_v0 }
  0xad   :  { %v286_v61 = vpack.c.bf16 %v285_v59, %v285_v59 }
  0xae   :  { %v270_v63 = vpop.f32.mrf.mxu2  ;;  %v257_v3 = vpop.f32.mrf.mxu1 }
  0xaf   :  { %v283_v1 = vpop.f32.mrf.mxu3  ;;  %427 = vmatmul.bf16.vlgmr.msrb.gmra.mxu0 %v286_v61 }
  0xb0   :  { %v244_v4 = vpop.f32.mrf.mxu0 }
  0xc6   :  { %v441_v5 = vpop.f32.mrf.mxu1 }
  0xce   :  { %v443_v6 = vpop.f32.mrf.mxu1 }
 0x12c   :  { %v428_v13 = vpop.f32.mrf.mxu0 }
 0x12d   :  { %v429_v14 = vadd.f32 %v850_v11, %v428_v13 }
 0x12f   :  { %v442_v17 = vadd.f32 %v441_v5, %v429_v14 }
 0x131   :  { %852 = vtanh.f32 %v442_v17 }
 0x134   :  { %v430_v19 = vpop.f32.mrf.mxu0 }
 0x137   :  { %v853_v21 = vpop.eup %852 }
 0x138   :  { %v446_v22 = vsub.f32 %v853_v21, %v1076_v16 }
 0x13a   :  { %v447_v23 = vmul.f32 %v446_v22, %v256_v2 }
 0x13c   :  { %v448_v24 = vadd.f32 %v447_v23, %v1076_v16 }
 0x13e   :  { %v758_v25 = vmul.f32 -1.442695, %v448_v24 }
 0x140   :  { %854 = vpow2.f32 %v758_v25 }
 0x146   :  { %v855_v26 = vpop.eup %854 }
 0x147   :  { %v452_v27 = vadd.f32 1.0, %v855_v26 }
 0x149   :  { %856 = vrcp.f32 %v452_v27  ;;  %v464_v33 = vand.u32 2147483648, %v452_v27  ;;  %v462_v35 = vand.u32 2147483647, %v452_v27  ;;  %vm458_vm1 = vweird.f32 %v452_v27 }
 0x14b   :  { %v465_v37 = vor.u32 1.1754944e-38, %v464_v33  ;;  %vm463_vm4 = vcmp.eq.f32.partialorder %v462_v35, 8.507059e+37 }
 0x14f   :  { %v857_v29 = vpop.eup %856 }
 0x150   :  { %v454_v30 = vmul.f32 %v857_v29, %v452_v27  ;;  %vm459_vm0 = vweird.f32 %v857_v29 }
 0x151   :  { %vm460_vm3 = vmor %vm458_vm1, %vm459_vm0 }
 0x152   :  { %v455_v31 = vsub.f32 1.0, %v454_v30 }
 0x154   :  { %v456_v34 = vmul.f32 %v857_v29, %v455_v31 }
 0x156   :  { %v457_v36 = vadd.f32 %v857_v29, %v456_v34 }
 0x158   :  { %v461_v16 = vsel %vm460_vm3, %v857_v29, %v457_v36 }
 0x159   :  { %v466_v38 = vsel %vm463_vm4, %v465_v37, %v461_v16 }
 0x15a   :  { %v473_v39 = vsel %vm470_vm2, %v466_v38, 0.0  ;;  %v792_v40 = vpack.c.bf16 %v466_v38, %v466_v38 }
 0x15b   :  { %557 = vst [vmem:[%s1208_s9] sm:$0xff] %v473_v39 }
 0x15c   :  { %793 = vmatmul.msk.bf16.vlgmr.msrb.gmra.mxu2 %vm791_vm5, %v792_v40 }
 0x1df   :  { %v552_v42 = vpop.f32.mrf.mxu2 }
 0x1e0   :  { %v553_v43 = vadd.f32 %v851_v41, %v552_v42 }
 0x1e2   :  { %556 = vst [vmem:[%s1209_s8] sm:$0xff] %v553_v43 }
 0x1e7   :  { %v554_v44 = vpop.f32.mrf.mxu2 }

</bundles_post_ra>
